<compile_context>
chip_gen: v7x
topology: tpu7x:2x2x1
jax: 0.10.0
libtpu: 0.0.40
codegen_flags: <defaults>
</compile_context>

<pallas_src>
import math

import jax
import jax.numpy as jnp
from jax.experimental import pallas as pl
from jax.experimental.pallas import tpu as pltpu

# ----------------------------- model hyper-params -----------------------------
N_NODES = 32
N_INPUTS = 64
N_OUTPUTS = 32          # module default n_outputs=32
N_LABELS = 16
OUT_PAD = 128           # lane-dense logits width (padded label dim)
S = 64.0                # module default s
M = 0.2                 # module default m
COS_M = math.cos(M)
SIN_M = math.sin(M)
TH = math.cos(math.pi - M)
MM = math.sin(math.pi - M) * M
NORM_EPS = 1e-12        # F.normalize eps


# --------------------------------- kernel -------------------------------------
def arc_margin_kernel(x_ref, adj_ref, w_slab_ref, wtn_ref, label_ref,
                      feat_ref, out_ref):
    x = x_ref[...]

    # ---- SAGEConv (reassociated): xw = x @ [W_l | W_r]  (single input projection) --
    xw = jnp.dot(x, w_slab_ref[0:N_INPUTS, :], preferred_element_type=jnp.float32)
    b_l = w_slab_ref[N_INPUTS:N_INPUTS + 1, 0:N_OUTPUTS]        # static slice: bias row
    feat = (jnp.dot(adj_ref[...], xw[:, 0:N_OUTPUTS],           # adj @ (x @ W_l)
                    preferred_element_type=jnp.float32)
            + xw[:, N_OUTPUTS:2 * N_OUTPUTS]                    # x @ W_r (32-lane shift, XLU)
            + b_l)
    feat_ref[...] = feat.astype(feat_ref.dtype)

    # ---- ReLU + F.normalize(h, dim=1) via a single exact rsqrt -------------------
    h = jnp.maximum(feat, 0.0)
    sumsq = jnp.sum(h * h, axis=-1, keepdims=True)
    hn = h * jax.lax.rsqrt(jnp.maximum(sumsq, NORM_EPS * NORM_EPS))

    # ---- arc-margin logits (classifier weight pre-normalized + lane-padded) ------
    cosine = jnp.dot(hn, wtn_ref[...], preferred_element_type=jnp.float32)  # [N, 128]
    sine = jnp.sqrt(jnp.clip(1.0 - cosine * cosine, 0.0, 1.0))
    phi = cosine * COS_M - sine * SIN_M
    phi = jnp.where(cosine > TH, phi, cosine - MM)                          # easy_margin=False

    # one_hot scatter == (iota(col) == label_i); padded cols (>= N_LABELS) stay False.
    one_hot = (jax.lax.broadcasted_iota(jnp.int32, cosine.shape, 1)
               == label_ref[...])
    out_ref[...] = (jnp.where(one_hot, phi, cosine) * S).astype(out_ref.dtype)


# ------------------------------ wrapper / glue ---------------------------------
def arc_margin_forward(params, x, adj_mean, label):
    n = x.shape[0]
    flops = 2 * (n * N_INPUTS * 2 * N_OUTPUTS          # x @ [W_l|W_r]
                 + n * n * N_OUTPUTS                    # adj @ xw_l
                 + n * N_OUTPUTS * OUT_PAD)             # hn @ wtn
    bytes_accessed = 4 * (x.size + adj_mean.size + params["w_slab"].size
                          + params["wtn_pad"].size + label.size
                          + n * N_OUTPUTS + n * OUT_PAD)
    feat, out_padded = pl.pallas_call(
        arc_margin_kernel,
        out_shape=(jax.ShapeDtypeStruct((n, N_OUTPUTS), jnp.float32),
                   jax.ShapeDtypeStruct((n, OUT_PAD), jnp.float32)),
        in_specs=[pl.BlockSpec(memory_space=pltpu.MemorySpace.VMEM)] * 5,
        out_specs=(pl.BlockSpec(memory_space=pltpu.MemorySpace.VMEM),
                   pl.BlockSpec(memory_space=pltpu.MemorySpace.VMEM)),
        cost_estimate=pl.CostEstimate(flops=flops,
                                      transcendentals=n + n * OUT_PAD,
                                      bytes_accessed=bytes_accessed),
    )(x, adj_mean, params["w_slab"], params["wtn_pad"], label)
    return feat, out_padded[:, :N_LABELS]


# ------------------------------ parameter init ----------------------------------
def _glorot(key, shape):
    fan_in, fan_out = shape
    s = math.sqrt(6.0 / (fan_in + fan_out))
    return jax.random.uniform(key, shape, jnp.float32, -s, s)


def init_params(key):
    k1, k2, k3 = jax.random.split(key, 3)
    w_l = _glorot(k1, (N_INPUTS, N_OUTPUTS))          # SAGEConv lin_l (x @ W layout)
    w_r = _glorot(k2, (N_INPUTS, N_OUTPUTS))          # SAGEConv lin_r (bias=False)
    b_l = jnp.zeros((N_OUTPUTS,), jnp.float32)        # lin_l bias
    weight = _glorot(k3, (N_LABELS, N_OUTPUTS))       # nn.init.xavier_uniform_

    # Packed slab [n_in + 8, 2*n_out]: rows 0..n_in-1 = [W_l | W_r],
    # row n_in holds the bias in columns 0..n_out-1 (rest zero).
    w_cat = jnp.concatenate([w_l, w_r], axis=1)                      # [64, 64]
    tail = jnp.zeros((8, 2 * N_OUTPUTS), jnp.float32).at[0, :N_OUTPUTS].set(b_l)
    w_slab = jnp.concatenate([w_cat, tail], axis=0)                  # [72, 64]

    # Exact F.normalize(weight, dim=1), transposed and zero-padded to 128 lanes.
    wn = weight / jnp.maximum(
        jnp.sqrt(jnp.sum(weight * weight, axis=1, keepdims=True)), NORM_EPS)
    wtn_pad = jnp.zeros((N_OUTPUTS, OUT_PAD), jnp.float32).at[:, :N_LABELS].set(wn.T)

    return dict(w_slab=w_slab, wtn_pad=wtn_pad)


# ----------------------------------- main ---------------------------------------
if __name__ == "__main__":
    key = jax.random.PRNGKey(0)
    kx, kl, kp = jax.random.split(key, 3)

    x = jax.random.normal(kx, (N_NODES, N_INPUTS), jnp.float32)
    label = jax.random.randint(kl, (N_NODES, 1), 0, N_LABELS, dtype=jnp.int32)

    # bidirectional ring graph; edge_index[0]=src, edge_index[1]=dst (PyG convention)
    idx = jnp.arange(N_NODES)
    src = jnp.concatenate([idx, idx])
    dst = jnp.concatenate([(idx + 1) % N_NODES, (idx - 1) % N_NODES])
    edge_index = jnp.stack([src, dst]).astype(jnp.int32)

    # mean-normalized dense adjacency: adj_mean[i, j] = 1/in_deg(i) iff edge j -> i
    # (SAGEConv default does NOT add self loops; isolated nodes aggregate to 0)
    adj = jnp.zeros((N_NODES, N_NODES), jnp.float32).at[edge_index[1], edge_index[0]].add(1.0)
    deg = jnp.sum(adj, axis=1, keepdims=True)
    adj_mean = adj / jnp.maximum(deg, 1.0)

    params = init_params(kp)
    feat, output = jax.jit(arc_margin_forward)(params, x, adj_mean, label)
    jax.block_until_ready((feat, output))

    assert feat.shape == (N_NODES, N_OUTPUTS)
    assert output.shape == (N_NODES, N_LABELS)
    assert bool(jnp.all(jnp.isfinite(feat))) and bool(jnp.all(jnp.isfinite(output)))
    print("KERNEL_OK")
</pallas_src>

<mosaic_0001>
module attributes {stable_mosaic.version = 11 : i64} {
  func.func @arc_margin_kernel(%arg0: memref<32x64xf32, #tpu.memory_space<vmem>>, %arg1: memref<32x32xf32, #tpu.memory_space<vmem>>, %arg2: memref<72x64xf32, #tpu.memory_space<vmem>>, %arg3: memref<32x128xf32, #tpu.memory_space<vmem>>, %arg4: memref<32x1xi32, #tpu.memory_space<vmem>>, %arg5: memref<32x32xf32, #tpu.memory_space<vmem>>, %arg6: memref<32x128xf32, #tpu.memory_space<vmem>>) attributes {dimension_semantics = [], scalar_prefetch = 0 : i64, scratch_operands = 0 : i64, tpu.core_type = #tpu.core_type<tc>} {
    %c0 = arith.constant 0 : index
    %c0_0 = arith.constant 0 : index
    %0 = vector.load %arg0[%c0, %c0_0] : memref<32x64xf32, #tpu.memory_space<vmem>>, vector<32x64xf32>
    %c0_1 = arith.constant 0 : index
    %c0_2 = arith.constant 0 : index
    %1 = vector.load %arg2[%c0_1, %c0_2] : memref<72x64xf32, #tpu.memory_space<vmem>>, vector<64x64xf32>
    %cst = arith.constant dense<0.000000e+00> : vector<32x64xf32>
    %2 = tpu.matmul %0, %1, %cst {dimension_numbers = #tpu.dot_dimension_numbers<[1], [0], [0], [1], [0, 0, 1, 1], [], []>} : vector<32x64xf32>, vector<64x64xf32>, vector<32x64xf32> -> vector<32x64xf32>
    %c64 = arith.constant 64 : index
    %c0_3 = arith.constant 0 : index
    %3 = vector.load %arg2[%c64, %c0_3] : memref<72x64xf32, #tpu.memory_space<vmem>>, vector<1x32xf32>
    %c0_4 = arith.constant 0 : index
    %c0_5 = arith.constant 0 : index
    %4 = vector.load %arg1[%c0_4, %c0_5] : memref<32x32xf32, #tpu.memory_space<vmem>>, vector<32x32xf32>
    %5 = vector.extract_strided_slice %2 {offsets = [0, 0], sizes = [32, 32], strides = [1, 1]} : vector<32x64xf32> to vector<32x32xf32>
    %cst_6 = arith.constant dense<0.000000e+00> : vector<32x32xf32>
    %6 = tpu.matmul %4, %5, %cst_6 {dimension_numbers = #tpu.dot_dimension_numbers<[1], [0], [0], [1], [0, 0, 1, 1], [], []>} : vector<32x32xf32>, vector<32x32xf32>, vector<32x32xf32> -> vector<32x32xf32>
    %7 = vector.extract_strided_slice %2 {offsets = [0, 32], sizes = [32, 32], strides = [1, 1]} : vector<32x64xf32> to vector<32x32xf32>
    %8 = arith.addf %6, %7 : vector<32x32xf32>
    %9 = vector.broadcast %3 : vector<1x32xf32> to vector<32x32xf32>
    %10 = arith.addf %8, %9 : vector<32x32xf32>
    %c0_7 = arith.constant 0 : index
    %c0_8 = arith.constant 0 : index
    %11 = vector.load %arg5[%c0_7, %c0_8] : memref<32x32xf32, #tpu.memory_space<vmem>>, vector<32x32xf32>
    tpu.vector_store %arg5[%c0_7, %c0_8], %10 {strides = array<i32>} : memref<32x32xf32, #tpu.memory_space<vmem>>, vector<32x32xf32>,
    %cst_9 = arith.constant 0.000000e+00 : f32
    %12 = vector.broadcast %cst_9 : f32 to vector<32x32xf32>
    %13 = arith.maximumf %10, %12 : vector<32x32xf32>
    %14 = arith.mulf %13, %13 : vector<32x32xf32>
    %cst_10 = arith.constant dense<0.000000e+00> : vector<32xf32>
    %15 = vector.multi_reduction <add>, %14, %cst_10 [1] : vector<32x32xf32> to vector<32xf32>
    %16 = vector.shape_cast %15 : vector<32xf32> to vector<32x1xf32>
    %cst_11 = arith.constant 1.000000e-24 : f32
    %17 = vector.broadcast %cst_11 : f32 to vector<32x1xf32>
    %18 = arith.maximumf %16, %17 : vector<32x1xf32>
    %19 = math.rsqrt %18 : vector<32x1xf32>
    %20 = vector.broadcast %19 : vector<32x1xf32> to vector<32x32xf32>
    %21 = arith.mulf %13, %20 : vector<32x32xf32>
    %c0_12 = arith.constant 0 : index
    %c0_13 = arith.constant 0 : index
    %22 = vector.load %arg3[%c0_12, %c0_13] : memref<32x128xf32, #tpu.memory_space<vmem>>, vector<32x128xf32>
    %cst_14 = arith.constant dense<0.000000e+00> : vector<32x128xf32>
    %23 = tpu.matmul %21, %22, %cst_14 {dimension_numbers = #tpu.dot_dimension_numbers<[1], [0], [0], [1], [0, 0, 1, 1], [], []>} : vector<32x32xf32>, vector<32x128xf32>, vector<32x128xf32> -> vector<32x128xf32>
    %24 = arith.mulf %23, %23 : vector<32x128xf32>
    %cst_15 = arith.constant 1.000000e+00 : f32
    %25 = vector.broadcast %cst_15 : f32 to vector<32x128xf32>
    %26 = arith.subf %25, %24 : vector<32x128xf32>
    %cst_16 = arith.constant 0.000000e+00 : f32
    %cst_17 = arith.constant 1.000000e+00 : f32
    %27 = vector.broadcast %cst_16 : f32 to vector<32x128xf32>
    %28 = arith.maximumf %27, %26 : vector<32x128xf32>
    %29 = vector.broadcast %cst_17 : f32 to vector<32x128xf32>
    %30 = arith.minimumf %29, %28 : vector<32x128xf32>
    %31 = math.sqrt %30 : vector<32x128xf32>
    %cst_18 = arith.constant 0.980066597 : f32
    %32 = vector.broadcast %cst_18 : f32 to vector<32x128xf32>
    %33 = arith.mulf %23, %32 : vector<32x128xf32>
    %cst_19 = arith.constant 0.198669329 : f32
    %34 = vector.broadcast %cst_19 : f32 to vector<32x128xf32>
    %35 = arith.mulf %31, %34 : vector<32x128xf32>
    %36 = arith.subf %33, %35 : vector<32x128xf32>
    %cst_20 = arith.constant -0.980066597 : f32
    %37 = vector.broadcast %cst_20 : f32 to vector<32x128xf32>
    %38 = arith.cmpf ogt, %23, %37 : vector<32x128xf32>
    %cst_21 = arith.constant 0.0397338644 : f32
    %39 = vector.broadcast %cst_21 : f32 to vector<32x128xf32>
    %40 = arith.subf %23, %39 : vector<32x128xf32>
    %41 = arith.select %38, %36, %40 : vector<32x128xi1>, vector<32x128xf32>
    %42 = tpu.iota {dimensions = array<i32: 1>} : vector<32x128xi32>
    %c0_22 = arith.constant 0 : index
    %c0_23 = arith.constant 0 : index
    %43 = vector.load %arg4[%c0_22, %c0_23] : memref<32x1xi32, #tpu.memory_space<vmem>>, vector<32x1xi32>
    %44 = vector.broadcast %43 : vector<32x1xi32> to vector<32x128xi32>
    %45 = arith.cmpi eq, %42, %44 : vector<32x128xi32>
    %46 = arith.select %45, %41, %23 : vector<32x128xi1>, vector<32x128xf32>
    %cst_24 = arith.constant 6.400000e+01 : f32
    %47 = vector.broadcast %cst_24 : f32 to vector<32x128xf32>
    %48 = arith.mulf %46, %47 : vector<32x128xf32>
    %c0_25 = arith.constant 0 : index
    %c0_26 = arith.constant 0 : index
    %49 = vector.load %arg6[%c0_25, %c0_26] : memref<32x128xf32, #tpu.memory_space<vmem>>, vector<32x128xf32>
    tpu.vector_store %arg6[%c0_25, %c0_26], %48 {strides = array<i32>} : memref<32x128xf32, #tpu.memory_space<vmem>>, vector<32x128xf32>,
    return
  }
}

</mosaic_0001>

<bundles_post_ra>
// kernel: arc_margin_forward.1
= control target key start
LH: loop header
LB: loop body
LE: loop exit
PB: predicated region body
PF: predicated region fallthrough
CT: control target
= control target key end

     0   :  { %vm35_vm0 = vcmask 523264   ;;  %s894_s0 = inlined_call_operand.vmem [shape: f32[32,64], index: 0, kind: input, shape index: {}]   ;;  %s895_s1 = inlined_call_operand.vmem [shape: f32[32,32], index: 1, kind: input, shape index: {}]   ;;  %s896_s2 = inlined_call_operand.vmem [shape: f32[72,64], index: 2, kind: input, shape index: {}]   ;;  %s897_s3 = inlined_call_operand.vmem [shape: f32[32,128], index: 3, kind: input, shape index: {}]   ;;  %s898_s4 = inlined_call_operand.vmem [shape: s32[32,1], index: 4, kind: input, shape index: {}]   ;;  %s899_s5 = inlined_call_operand.hbm [shape: f32[32,32], index: 5, kind: output, shape index: {0}]   ;;  %s900_s6 = inlined_call_operand.vmem [shape: f32[32,128], index: 6, kind: output, shape index: {1}]  }
   0x1   :  { %v27_v0 = vld [vmem:[%s896_s2] sm:$0xff]  ;;  %v28_v1 = vld [vmem:[%s896_s2 + $0x8] sm:$0xff]  ;;  %v29_v2 = vld [vmem:[%s896_s2 + $0x10] sm:$0xff] }
   0x2   :  { %v614_v3 = vpack.c.bf16 %v28_v1, %v27_v0  ;;  %v30_v4 = vld [vmem:[%s896_s2 + $0x18] sm:$0xff]  ;;  %v31_v6 = vld [vmem:[%s896_s2 + $0x20] sm:$0xff]  ;;  %v32_v7 = vld [vmem:[%s896_s2 + $0x28] sm:$0xff] }
   0x3   :  { %v618_v5 = vpack.c.bf16 %v30_v4, %v29_v2  ;;  %v23_v8 = vld [vmem:[%s894_s0] sm:$0xff] }
   0x4   :  { %615 = vmatprep.subr.bf16.mxu0 %v614_v3  ;;  %580 = vmatprep.mubr.msk.f32.mxu0 %vm35_vm0, %v23_v8 }
   0x5   :  { %617 = vmatpush3.bf16.msra.mxu0 %v614_v3 }
   0x6   :  { %12 = vsyncpa [#allocation3], 0  ;;  %619 = vmatprep.subr.bf16.mxu0 %v618_v5  ;;  %v622_v9 = vpack.c.bf16 %v32_v7, %v31_v6  ;;  %v33_v10 = vld [vmem:[%s896_s2 + $0x30] sm:$0xff]  ;;  %v34_v11 = vld [vmem:[%s896_s2 + $0x38] sm:$0xff]  ;;  %vm154_vm1 = vcmask 261120   ;;  %s693_s23 = smov 96  }
   0x7   :  { %v626_v12 = vpack.c.bf16 %v34_v11, %v33_v10  ;;  %v24_v13 = vld [vmem:[%s894_s0 + $0x8] sm:$0xff]  ;;  %v25_v14 = vld [vmem:[%s894_s0 + $0x10] sm:$0xff]  ;;  %v26_v15 = vld [vmem:[%s894_s0 + $0x18] sm:$0xff]  ;;  %v694_v62 = vmov 0  }
   0x8   :  { %v134_v16 = vld [vmem:[%s895_s1] sm:$0xff]  ;;  %v135_v23 = vld [vmem:[%s895_s1 + $0x8] sm:$0xff]  ;;  %v136_v24 = vld [vmem:[%s895_s1 + $0x10] sm:$0xff]  ;;  %651 = vset.pattern.permute.xlu1 %v694_v62  ;;  %652 = vset.pattern.permute.xlu0 %v694_v62 }
   0x9   :  { %621 = vmatpush3.bf16.msra.mxu0 %v618_v5  ;;  %594 = vmatprep.mubr.msk.f32.mxu1 %vm154_vm1, %v134_v16  ;;  %v137_v25 = vld [vmem:[%s895_s1 + $0x18] sm:$0xff]  ;;  %v527_v29 = vld [vmem:[%s896_s2 + $0x40] ss:$0 sm:$0xff]  ;;  %v297_v56 = vld [vmem:[%s897_s3 + $0x8] sm:$0xff] }
   0xa   :  { %623 = vmatprep.subr.bf16.mxu0 %v622_v9  ;;  %v296_v55 = vld [vmem:[%s897_s3] sm:$0xff]  ;;  %v298_v58 = vld [vmem:[%s897_s3 + $0x10] sm:$0xff]  ;;  %v299_v59 = vld [vmem:[%s897_s3 + $0x18] sm:$0xff] }
   0xb   :  { %v638_v57 = vpack.c.bf16 %v297_v56, %v296_v55  ;;  %v642_v60 = vpack.c.bf16 %v299_v59, %v298_v58  ;;  %v467_v61 = vld [vmem:[%s898_s4] sm:$0xff]  ;;  %v468_v63 = vld [vmem:[%s898_s4 + $0x8] sm:$0xff]  ;;  %v469_v0 = vld [vmem:[%s898_s4 + $0x10] sm:$0xff] }
   0xc   :  { %v470_v1 = vld [vmem:[%s898_s4 + $0x18] sm:$0xff]  ;;  %s695_s4 = smov [#allocation2]  }
   0xd   :  { %625 = vmatpush3.bf16.msra.mxu0 %v622_v9  ;;  %s504_s20 = sshll.u32 %s695_s4, 4  ;;  %s505_s20 = int_to_ptr.vmem [resolvable:$true] %s504_s20 }
   0xe   :  { %627 = vmatprep.subr.bf16.mxu0 %v626_v12  ;;  %s669_s21 = scalar_lea.vmem %s505_s20, 512  ;;  %p674_p1 = scmp.lt.s32.totalorder %s505_s20, %s505_s20 }
   0xf   :  { %p670_p0 = scmp.ne.s32.totalorder %s505_s20, %s669_s21  ;;  %p675_p2 = scmp.lt.s32.totalorder %s669_s21, %s669_s21 }
  0x11   :  { %629 = vmatpush3.bf16.msra.mxu0 %v626_v12  ;;  %p676_p3 = por %p675_p2, %p674_p1 }
  0x13   :  { %p677_p4 = pnand %p676_p3, %p670_p0 }
  0x14   :  { %581 = vmatmul.mubr.msk.f32.vlgmr.msra.gmra.mrb[0].mxu0 %vm35_vm0, %v24_v13 }
  0x15   :  { %583 = vmatprep.mubr.msk.f32.mxu0 %vm35_vm0, %v25_v14 }
  0x18   :  { %584 = vmatmul.mubr.msk.f32.gmra.mrb[2].mxu0 %vm35_vm0, %v26_v15 }
  0xe7   :  { %v582_v17 = vpop.f32.mrb[0].mxu0 }
  0xe8   :  { %v114_v18 = vpop.f32.mrb[1].mxu0 }
  0xe9   :  { %142 = vrot.lane.b32.xlu0 %v114_v18, %s693_s23  ;;  %v630_v19 = vpack.c.bf16 %v582_v17, %v114_v18 }
  0xeb   :  { %v585_v20 = vpop.f32.mrb[2].mxu0  ;;  %631 = vmatprep.subr.bf16.mxu1 %v630_v19 }
  0xec   :  { %v124_v21 = vpop.f32.mrb[3].mxu0  ;;  %633 = vmatpush3.bf16.msra.mxu1 %v630_v19 }
  0xed   :  { %v634_v22 = vpack.c.bf16 %v585_v20, %v124_v21  ;;  %144 = vrot.lane.b32.xlu0 %v582_v17, %s693_s23  ;;  %146 = vrot.lane.b32.xlu1 %v124_v21, %s693_s23 }
  0xef   :  { %635 = vmatprep.subr.bf16.mxu1 %v634_v22 }
  0xf0   :  { %637 = vmatpush3.bf16.msra.mxu1 %v634_v22 }
  0xf1   :  { %148 = vrot.lane.b32.xlu1 %v585_v20, %s693_s23  ;;  %639 = vmatprep.subr.bf16.mxu1 %v638_v57 }
  0xf3   :  { %595 = vmatmul.mubr.msk.f32.vlgmr.msra.gmra.mrb[0].mxu1 %vm154_vm1, %v135_v23 }
  0xf4   :  { %597 = vmatprep.mubr.msk.f32.mxu1 %vm154_vm1, %v136_v24  ;;  %641 = vmatpush3.bf16.msra.mxu1 %v638_v57 }
  0xf5   :  { %643 = vmatprep.subr.bf16.mxu1 %v642_v60 }
  0xf7   :  { %598 = vmatmul.mubr.msk.f32.gmra.mrb[2].mxu1 %vm154_vm1, %v137_v25 }
  0xf8   :  { %645 = vmatpush3.bf16.msra.mxu1 %v642_v60 }
 0x15b   :  { %v143_v26 = vpop.permute.xlu0 %142 }
 0x15f   :  { %v147_v27 = vpop.permute.xlu1 %146  ;;  %v145_v28 = vpop.permute.xlu0 %144 }
 0x163   :  { %v149_v35 = vpop.permute.xlu1 %148 }
 0x1c6   :  { %v596_v30 = vpop.f32.mrb[0].mxu1 }
 0x1c7   :  { %v239_v31 = vadd.f32 %v596_v30, %v145_v28  ;;  %v233_v32 = vpop.f32.mrb[1].mxu1 }
 0x1c8   :  { %v234_v33 = vadd.f32 %v233_v32, %v143_v26 }
 0x1c9   :  { %v257_v34 = vadd.f32 %v527_v29, %v239_v31 }
 0x1ca   :  { %v256_v36 = vadd.f32 %v527_v29, %v234_v33  ;;  %v599_v37 = vpop.f32.mrb[2].mxu1 }
 0x1cb   :  { %261 = vst.msk [vmem:[#allocation2 + $0x8] sm:$0xff] %vm154_vm1, %v257_v34  ;;  %v249_v38 = vadd.f32 %v599_v37, %v149_v35  ;;  %v243_v39 = vpop.f32.mrb[3].mxu1  ;;  %v265_v40 = vmax.f32 %v257_v34, 0.0 }
 0x1cc   :  { %260 = vst.msk [vmem:[#allocation2] sm:$0xff] %vm154_vm1, %v256_v36  ;;  %v244_v41 = vadd.f32 %v243_v39, %v147_v27  ;;  %v264_v42 = vmax.f32 %v256_v36, 0.0 }
 0x1cd   :  { %v259_v43 = vadd.f32 %v527_v29, %v249_v38  ;;  %v269_v44 = vmul.f32 %v265_v40, %v265_v40 }
 0x1ce   :  { %v258_v45 = vadd.f32 %v527_v29, %v244_v41  ;;  %v268_v46 = vmul.f32 %v264_v42, %v264_v42 }
 0x1cf   :  { %263 = vst.msk [vmem:[#allocation2 + $0x18] sm:$0xff] %vm154_vm1, %v259_v43  ;;  %v275_v47 = vsel %vm154_vm1, %v269_v44, 0.0  ;;  %v267_v50 = vmax.f32 %v259_v43, 0.0 }
 0x1d0   :  { %262 = vst.msk [vmem:[#allocation2 + $0x10] sm:$0xff] %vm154_vm1, %v258_v45  ;;  %276 = vadd.xlane.f32.xlu1 %v275_v47  ;;  %v272_v48 = vsel %vm154_vm1, %v268_v46, 0.0  ;;  %v266_v49 = vmax.f32 %v258_v45, 0.0 }
 0x1d1   :  { %273 = vadd.xlane.f32.xlu0 %v272_v48  ;;  %v271_v53 = vmul.f32 %v267_v50, %v267_v50 }
 0x1d2   :  { %v270_v51 = vmul.f32 %v266_v49, %v266_v49 }
 0x1d3   :  { %v281_v54 = vsel %vm154_vm1, %v271_v53, 0.0 }
 0x1d4   :  { %v278_v52 = vsel %vm154_vm1, %v270_v51, 0.0 }
 0x1d5   :  { %279 = vadd.xlane.f32.xlu0 %v278_v52 }
 0x1d9   :  { %282 = vadd.xlane.f32.xlu0 %v281_v54 }
 0x1e1   :  { %472 = vperm.xlu1 %651, %v467_v61  }
 0x1e5   :  { %478 = vperm.xlu1 %651, %v469_v0  }
 0x1e9   :  { %481 = vperm.xlu1 %651, %v470_v1  }
 0x1ef   :  { %475 = vperm.xlu0 %652, %v468_v63  }
 0x25d   :  { %v277_v2 = vpop.xlane.xlu1 %276 }
 0x25e   :  { %v285_v3 = vmax.f32 %v277_v2, 1e-24  ;;  %v274_v4 = vpop.xlane.xlu0 %273 }
 0x25f   :  { %v284_v5 = vmax.f32 %v274_v4, 1e-24 }
 0x260   :  { %653 = vrsqrt.f32 %v285_v3 }
 0x261   :  { %655 = vrsqrt.f32 %v284_v5 }
 0x262   :  { %v280_v6 = vpop.xlane.xlu0 %279 }
 0x263   :  { %v286_v7 = vmax.f32 %v280_v6, 1e-24 }
 0x265   :  { %657 = vrsqrt.f32 %v286_v7 }
 0x266   :  { %v283_v8 = vpop.xlane.xlu0 %282 }
 0x267   :  { %v287_v9 = vmax.f32 %v283_v8, 1e-24 }
 0x269   :  { %659 = vrsqrt.f32 %v287_v9 }
 0x26a   :  { %v654_v10 = vpop.eup %653 }
 0x26b   :  { %v656_v11 = vpop.eup %655  ;;  %v293_v13 = vmul.f32 %v654_v10, %v265_v40 }
 0x26c   :  { %v292_v12 = vmul.f32 %v656_v11, %v264_v42 }
 0x26e   :  { %608 = vmatprep.mubr.msk.f32.mxu1 %vm154_vm1, %v292_v12 }
 0x26f   :  { %v658_v14 = vpop.eup %657  ;;  %609 = vmatmul.mubr.msk.f32.vlgmr.msra.gmra.mrb[4].mxu1 %vm154_vm1, %v293_v13 }
 0x270   :  { %v294_v15 = vmul.f32 %v658_v14, %v266_v49 }
 0x272   :  { %611 = vmatprep.mubr.msk.f32.mxu1 %vm154_vm1, %v294_v15 }
 0x273   :  { %v660_v16 = vpop.eup %659 }
 0x274   :  { %v295_v17 = vmul.f32 %v660_v16, %v267_v50 }
 0x276   :  { %612 = vmatmul.mubr.msk.f32.gmra.mrb[6].mxu1 %vm154_vm1, %v295_v17 }
 0x277   :  { %680 = shalt.err (!%p677_p4)
}
 0x278   :  { %s681_s0 = scalar_lea.hbm %s899_s5, 512 }
 0x279   :  { %p682_p5 = scmp.ne.s32.totalorder %s899_s5, %s681_s0  ;;  %p685_p6 = scmp.lt.u32.totalorder %s681_s0, %s899_s5 }
 0x27b   :  { %p687_p7 = pnand %p685_p6, %p682_p5 }
 0x27d   :  { %690 = shalt.err (!%p687_p7)
}
 0x27e   :  { %s696_s28 = smov 128   ;;  %s697_s29 = smov 8   ;;  %v465_v38 = vlaneseq  ;;  %v473_v42 = vpop.permute.xlu1 %472  ;;  %v476_v48 = vpop.permute.xlu0 %475 }
 0x27f   :  { %510 = dma.vmem_to_hbm [thread:$0]  %s505_s20, 512, %s899_s5, [#allocation3], %s696_s28, %s696_s28, %s697_s29  }
 0x280   :  { %v856_v40 = vand.u32 127, %v465_v38 }
 0x282   :  { %vm483_vm6 = vcmp.eq.s32.totalorder %v856_v40, %v473_v42  ;;  %vm484_vm7 = vcmp.eq.s32.totalorder %v856_v40, %v476_v48  ;;  %v479_v59 = vpop.permute.xlu1 %478 }
 0x283   :  { %vm485_vm1 = vcmp.eq.s32.totalorder %v856_v40, %v479_v59 }
 0x286   :  { %v482_v17 = vpop.permute.xlu1 %481 }
 0x287   :  { %vm486_vm0 = vcmp.eq.s32.totalorder %v856_v40, %v482_v17 }
 0x342   :  { %v840_v18 = vpop.f32.mrb[4].mxu1 }
 0x343   :  { %v398_v19 = vmul.f32 %v840_v18, %v840_v18  ;;  %v844_v20 = vpop.f32.mrb[5].mxu1  ;;  %v442_v51 = vmul.f32 0.9800666, %v840_v18  ;;  %v533_v52 = vadd.f32 -0.039733864, %v840_v18 }
 0x344   :  { %v397_v21 = vmul.f32 %v844_v20, %v844_v20  ;;  %v441_v55 = vmul.f32 0.9800666, %v844_v20  ;;  %v532_v56 = vadd.f32 -0.039733864, %v844_v20  ;;  %vm453_vm8 = vcmp.gt.f32.partialorder %v844_v20, -0.9800666 }
 0x345   :  { %v402_v22 = vsub.f32 1.0, %v398_v19  ;;  %vm454_vm10 = vcmp.gt.f32.partialorder %v840_v18, -0.9800666 }
 0x346   :  { %v401_v23 = vsub.f32 1.0, %v397_v21 }
 0x347   :  { %v406_v24 = vmax.f32 %v402_v22, 0.0 }
 0x348   :  { %v405_v25 = vmax.f32 %v401_v23, 0.0 }
 0x349   :  { %v410_v26 = vmin.f32 %v406_v24, 1.0  ;;  %v848_v27 = vpop.f32.mrb[6].mxu1 }
 0x34a   :  { %v409_v28 = vmin.f32 %v405_v25, 1.0  ;;  %v400_v29 = vmul.f32 %v848_v27, %v848_v27  ;;  %v852_v30 = vpop.f32.mrb[7].mxu1  ;;  %v444_v11 = vmul.f32 0.9800666, %v848_v27  ;;  %vm456_vm14 = vcmp.gt.f32.partialorder %v848_v27, -0.9800666 }
 0x34b   :  { %661 = vrsqrt.f32 %v410_v26  ;;  %v399_v31 = vmul.f32 %v852_v30, %v852_v30  ;;  %vm422_vm2 = vcmp.eq.f32.partialorder %v410_v26, inf  ;;  %v425_v45 = vand.u32 2147483648, %v410_v26 }
 0x34c   :  { %663 = vrsqrt.f32 %v409_v28  ;;  %v404_v32 = vsub.f32 1.0, %v400_v29  ;;  %vm415_vm3 = vcmp.eq.f32.partialorder %v409_v28, inf  ;;  %v418_v46 = vand.u32 2147483648, %v409_v28 }
 0x34d   :  { %v403_v33 = vsub.f32 1.0, %v399_v31  ;;  %vm424_vm4 = vcmp.eq.f32.partialorder %v410_v26, 0.0  ;;  %vm417_vm5 = vcmp.eq.f32.partialorder %v409_v28, 0.0  ;;  %v443_v15 = vmul.f32 0.9800666, %v852_v30 }
 0x34e   :  { %v408_v34 = vmax.f32 %v404_v32, 0.0  ;;  %v534_v21 = vadd.f32 -0.039733864, %v852_v30  ;;  %vm455_vm15 = vcmp.gt.f32.partialorder %v852_v30, -0.9800666 }
 0x34f   :  { %v407_v35 = vmax.f32 %v403_v33, 0.0 }
 0x350   :  { %v412_v36 = vmin.f32 %v408_v34, 1.0 }
 0x351   :  { %v411_v37 = vmin.f32 %v407_v35, 1.0 }
 0x352   :  { %665 = vrsqrt.f32 %v412_v36  ;;  %vm436_vm9 = vcmp.eq.f32.partialorder %v412_v36, inf  ;;  %vm438_vm11 = vcmp.eq.f32.partialorder %v412_v36, 0.0  ;;  %v439_v0 = vand.u32 2147483648, %v412_v36 }
 0x353   :  { %667 = vrsqrt.f32 %v411_v37  ;;  %vm429_vm12 = vcmp.eq.f32.partialorder %v411_v37, inf  ;;  %vm431_vm13 = vcmp.eq.f32.partialorder %v411_v37, 0.0  ;;  %v432_v3 = vand.u32 2147483648, %v411_v37 }
 0x355   :  { %v662_v39 = vpop.eup %661 }
 0x356   :  { %v664_v41 = vpop.eup %663  ;;  %v421_v43 = vmul.f32 %v662_v39, %v410_v26 }
 0x357   :  { %v414_v44 = vmul.f32 %v664_v41, %v409_v28 }
 0x358   :  { %v423_v47 = vsel %vm422_vm2, %v410_v26, %v421_v43 }
 0x359   :  { %v416_v49 = vsel %vm415_vm3, %v409_v28, %v414_v44  ;;  %v426_v50 = vsel %vm424_vm4, %v425_v45, %v423_v47 }
 0x35a   :  { %v419_v53 = vsel %vm417_vm5, %v418_v46, %v416_v49  ;;  %v446_v54 = vmul.f32 0.19866933, %v426_v50 }
 0x35b   :  { %v445_v57 = vmul.f32 0.19866933, %v419_v53 }
 0x35c   :  { %v666_v58 = vpop.eup %665  ;;  %v450_v60 = vsub.f32 %v442_v51, %v446_v54 }
 0x35d   :  { %v668_v61 = vpop.eup %667  ;;  %v449_v62 = vsub.f32 %v441_v55, %v445_v57  ;;  %v435_v63 = vmul.f32 %v666_v58, %v412_v36 }
 0x35e   :  { %v428_v1 = vmul.f32 %v668_v61, %v411_v37  ;;  %v462_v2 = vsel %vm454_vm10, %v450_v60, %v533_v52 }
 0x35f   :  { %v461_v4 = vsel %vm453_vm8, %v449_v62, %v532_v56  ;;  %v437_v5 = vsel %vm436_vm9, %v412_v36, %v435_v63  ;;  %v488_v6 = vsel %vm484_vm7, %v462_v2, %v840_v18  ;;  %v535_v18 = vadd.f32 -0.039733864, %v848_v27 }
 0x360   :  { %v430_v7 = vsel %vm429_vm12, %v411_v37, %v428_v1  ;;  %v487_v8 = vsel %vm483_vm6, %v461_v4, %v844_v20  ;;  %v440_v9 = vsel %vm438_vm11, %v439_v0, %v437_v5  ;;  %v492_v10 = vmul.f32 64.0, %v488_v6 }
 0x361   :  { %v433_v12 = vsel %vm431_vm13, %v432_v3, %v430_v7  ;;  %v491_v13 = vmul.f32 64.0, %v487_v8  ;;  %v448_v14 = vmul.f32 0.19866933, %v440_v9 }
 0x362   :  { %v447_v16 = vmul.f32 0.19866933, %v433_v12  ;;  %496 = vst [vmem:[%s900_s6 + $0x8] sm:$0xff] %v492_v10 }
 0x363   :  { %495 = vst [vmem:[%s900_s6] sm:$0xff] %v491_v13  ;;  %v452_v19 = vsub.f32 %v444_v11, %v448_v14 }
 0x364   :  { %v451_v20 = vsub.f32 %v443_v15, %v447_v16 }
 0x365   :  { %v464_v22 = vsel %vm456_vm14, %v452_v19, %v535_v18 }
 0x366   :  { %v463_v23 = vsel %vm455_vm15, %v451_v20, %v534_v21  ;;  %v490_v24 = vsel %vm486_vm0, %v464_v22, %v848_v27 }
 0x367   :  { %v489_v25 = vsel %vm485_vm1, %v463_v23, %v852_v30  ;;  %v494_v26 = vmul.f32 64.0, %v490_v24 }
 0x368   :  { %v493_v28 = vmul.f32 64.0, %v489_v25 }
 0x369   :  { %498 = vst [vmem:[%s900_s6 + $0x18] sm:$0xff] %v494_v26 }
 0x36a   :  { %497 = vst [vmem:[%s900_s6 + $0x10] sm:$0xff] %v493_v28 }
 0x36b   :  { %691 = dma.done.wait [#allocation3], 512  }
 0x36c   :  { %692 = vsyncadd [#allocation3], 4294966784 }
 0x36d   :  { %518 = vsyncpa [#allocation3], 1 }

</bundles_post_ra>
